<compile_context>
chip_gen: v5e
topology: v5e:2x2
jax: 0.10.0
libtpu: 0.0.40
codegen_flags: <defaults>
</compile_context>

<pallas_src>
import functools

import jax
import jax.numpy as jnp
import numpy as np
from jax.experimental import pallas as pl
from jax.experimental.pallas import tpu as pltpu


def _round_up(a, b):
    return (a + b - 1) // b * b


def _split_bf16(v):
    """f32 value -> (hi, lo) bf16 pair with hi + lo ~ v to ~f32 accuracy."""
    hi = v.astype(jnp.bfloat16)
    lo = (v - hi.astype(jnp.float32)).astype(jnp.bfloat16)
    return hi, lo


def _igc_kernel(x_ref, adj_ref, deg_ref, w_ref, b_ref, out_ref,
                wf_hi, wf_lo, b1_hi, b1_lo, *, deg_col, resident_adj):
    # grid = (pass, row_tile); passes and row tiles run sequentially on one core.
    p = pl.program_id(0)
    i = pl.program_id(1)
    tm = out_ref.shape[0]
    row0 = pl.multiple_of(i * tm, tm)
    rows = pl.ds(row0, tm)

    def adj_tile():
        # bf16 adjacency straight into the MXU (no f32 upcast, no hidden VMEM copy).
        if resident_adj:
            return adj_ref[rows, :]
        return adj_ref[...]

    def store_split(hi_ref, lo_ref, v):
        hi, lo = _split_bf16(v)
        hi_ref[rows, :] = hi
        lo_ref[rows, :] = lo

    def load_rows(hi_ref, lo_ref):
        return (hi_ref[rows, :].astype(jnp.float32)
                + lo_ref[rows, :].astype(jnp.float32))

    def adj_dot(hi_ref, lo_ref):
        # A @ (hi + lo): two bf16 MXU matmuls with f32 accumulation.
        a = adj_tile()
        return (jnp.dot(a, hi_ref[...], preferred_element_type=jnp.float32)
                + jnp.dot(a, lo_ref[...], preferred_element_type=jnp.float32))

    # ---- pass 0: wfdeg = [x | deg] @ [W | e_deg] + [b | 0] -----------------------
    @pl.when(p == 0)
    def _():
        wf = jnp.dot(x_ref[...], w_ref[...],
                     preferred_element_type=jnp.float32) + b_ref[...]
        store_split(wf_hi, wf_lo, wf)

    # ---- pass 1: buf1 = diag(deg) @ (A @ [wf | deg]) = [temp1 | A_un @ deg] ------
    @pl.when(p == 1)
    def _():
        deg = deg_ref[...]                                  # (tm, 1) f32
        store_split(b1_hi, b1_lo, deg * adj_dot(wf_hi, wf_lo))

    # ---- pass 2: temp2 = deg*(A@temp1)/deg_brother/deg_safe; had = wf*(temp2-wf) -
    @pl.when(p == 2)
    def _():
        deg = deg_ref[...]
        z = adj_dot(b1_hi, b1_lo)                           # [A@temp1 | ...]
        mine = load_rows(b1_hi, b1_lo)                      # own rows of buf1
        db = mine[:, deg_col:deg_col + 1] - deg             # degree_brother
        db = jnp.where(db == 0.0, 1.0, db)
        deg_safe = jnp.where(deg == 0.0, 1.0, deg)
        scale = deg * pl.reciprocal(db * deg_safe, approx=False)
        temp2 = scale * z
        wf = load_rows(wf_hi, wf_lo)
        # Column `deg_col` holds deg, not wf; it only pollutes an output column that
        # is sliced away in the wrapper.  Padding columns stay exactly zero.
        store_split(wf_hi, wf_lo, wf * (temp2 - wf))        # hadamard aliased onto wfdeg

    # ---- pass 3: out = A @ hadamard ----------------------------------------------
    @pl.when(p == 3)
    def _():
        out_ref[...] = adj_dot(wf_hi, wf_lo)


def _vmem_fits(tm, np_, fp, f_in_aug, resident, budget):
    scratch = 4 * np_ * fp * 2                               # wf/buf1 hi+lo (bf16)
    fixed = (2 * _round_up(f_in_aug, 8) * fp * 4             # W (constant block)
             + 2 * 8 * fp * 4)                               # bias
    per_tile = (2 * tm * _round_up(f_in_aug, 128) * 4        # x blocks
                + 2 * tm * 128 * 4                           # deg blocks
                + 2 * tm * fp * 4)                           # out blocks
    adj = 2 * (np_ * np_ if resident else tm * np_) * 2      # bf16 adjacency blocks
    return scratch + fixed + per_tile + adj <= budget


def interaction_graph_convolution(node_features, adjacency, degree, weight, bias,
                                  *, tm=None, force_stream=False):
    """node_features: [N, F_in]; adjacency: [N, N] (0/1); degree: [N];
    weight: [F_in, F_out] (transposed vs torch); bias: [F_out]."""
    n, f_in = node_features.shape
    f_out = weight.shape[1]
    f32 = jnp.float32

    fp = _round_up(f_out + 1, 128)           # lane-dense F_out + fused degree column
    deg_col = f_out
    f_in_aug = f_in + 1                      # x augmented with the degree column

    try:
        cap = pltpu.get_tpu_info().vmem_capacity_bytes
    except Exception:                        # pragma: no cover - conservative default
        cap = 64 * 2**20                     # v7x per-core VMEM (smallest)
    budget = max(int(0.8 * cap), 16 * 2**20)

    # Row-tile candidates (multiples of 16 keep bf16 scratch row offsets aligned).
    if tm is not None:
        assert tm % 16 == 0
        cands = [tm]
    elif n <= 256:
        cands = [_round_up(n, 16)]
    else:
        # 256-row tiles fill the 256-wide v6e/v7x MXU and halve grid-step overhead;
        # harmless on v5e (128-wide MXU: overhead amortization only).
        cands = [256, 128, 64, 32, 16]

    plan = None
    if not force_stream:
        for t in cands:                      # prefer keeping A resident (3x less HBM)
            if _vmem_fits(t, _round_up(n, t), fp, f_in_aug, True, budget):
                plan = (t, True)
                break
    if plan is None:
        for t in cands:
            if _vmem_fits(t, _round_up(n, t), fp, f_in_aug, False, budget):
                plan = (t, False)
                break
    if plan is None:
        # TODO(synk): K-tile the adjacency (accumulate over a k grid axis, bf16
        # scratch) so VMEM stays bounded for very large N on v7x's 64 MiB VMEM.
        plan = (cands[-1], False)
    tm, resident = plan
    np_ = _round_up(n, tm)
    nt = np_ // tm

    # Zero padding is safe: padded adjacency rows/cols and padded deg are zero, so
    # padded rows never leak into real output rows (sliced off at the end).
    # NOTE: bf16 adjacency storage is exact only for 0/1 (small-integer) edges.
    x_aug = jnp.zeros((np_, f_in_aug), f32)
    x_aug = x_aug.at[:n, :f_in].set(node_features.astype(f32))
    x_aug = x_aug.at[:n, f_in].set(degree.astype(f32))
    w_aug = jnp.zeros((f_in_aug, fp), f32).at[:f_in, :f_out].set(weight.astype(f32))
    w_aug = w_aug.at[f_in, deg_col].set(1.0)
    b_p = jnp.zeros((1, fp), f32).at[0, :f_out].set(bias.astype(f32))
    adj_p = jnp.zeros((np_, np_), jnp.bfloat16).at[:n, :n].set(
        adjacency.astype(jnp.bfloat16))
    deg_p = jnp.zeros((np_, 1), f32).at[:n, :].set(degree.reshape(n, 1).astype(f32))

    if resident:
        # Constant block index -> A is DMA'd once and stays resident in VMEM.
        adj_spec = pl.BlockSpec((np_, np_), lambda p, i: (0, 0))
    else:
        # Streamed (tm, N) strips; parked during pass 0 (which never reads A).
        adj_spec = pl.BlockSpec((tm, np_), lambda p, i: (jnp.where(p == 0, 0, i), 0))

    grid_spec = pltpu.PrefetchScalarGridSpec(
        num_scalar_prefetch=0,
        grid=(4, nt),                        # (pass, row_tile); row_tile fastest
        in_specs=[
            # x only read in pass 0 -> parked elsewhere (no wasted HBM reads).
            pl.BlockSpec((tm, f_in_aug), lambda p, i: (jnp.where(p == 0, i, 0), 0)),
            adj_spec,
            # deg only read in passes 1-2.
            pl.BlockSpec((tm, 1),
                         lambda p, i: (jnp.where((p == 1) | (p == 2), i, 0), 0)),
            pl.BlockSpec((f_in_aug, fp), lambda p, i: (0, 0)),                   # W
            pl.BlockSpec((1, fp), lambda p, i: (0, 0)),                          # b
        ],
        # Output only written in pass 3 -> parked during passes 0-2 so no
        # uninitialized blocks are written back to HBM.
        out_specs=pl.BlockSpec((tm, fp), lambda p, i: (jnp.where(p == 3, i, 0), 0)),
        scratch_shapes=[
            pltpu.VMEM((np_, fp), jnp.bfloat16),   # wfdeg hi   (reused for hadamard)
            pltpu.VMEM((np_, fp), jnp.bfloat16),   # wfdeg lo
            pltpu.VMEM((np_, fp), jnp.bfloat16),   # buf1 hi    [temp1 | A_un @ deg]
            pltpu.VMEM((np_, fp), jnp.bfloat16),   # buf1 lo
        ],
    )

    out = pl.pallas_call(
        functools.partial(_igc_kernel, deg_col=deg_col, resident_adj=resident),
        out_shape=jax.ShapeDtypeStruct((np_, fp), f32),
        grid_spec=grid_spec,
        compiler_params=pltpu.CompilerParams(
            # Scratch is carried across both grid axes -> both stay sequential.
            # TODO(synk): dual-TC (v7x) by batching independent graphs on a leading
            # parallel axis or splitting the fp lane dimension across cores.
            dimension_semantics=("arbitrary", "arbitrary"),
            vmem_limit_bytes=int(budget)),
    )(x_aug, adj_p, deg_p, w_aug, b_p)

    return out[:n, :f_out]


def _reference(node_features, adjacency, degree, weight, bias):
    # Literal transcription of the PyTorch forward (sparse.mm == dense matmul).
    x = node_features.astype(jnp.float32)
    deg = degree.reshape(-1, 1).astype(jnp.float32)
    adj = adjacency.astype(jnp.float32)
    adj_un = adj * deg
    deg_brother = adj_un @ deg - deg
    deg_brother = jnp.where(deg_brother == 0.0, 1.0, deg_brother)
    adj_bro = adj_un / deg_brother
    wf = x @ weight + bias.reshape(1, -1)
    temp2 = adj_bro @ (adj_un @ wf)
    deg_safe = jnp.where(deg == 0.0, 1.0, deg)
    temp2 = temp2 / deg_safe
    return adj @ (wf * (temp2 - wf))


if __name__ == "__main__":
    key = jax.random.PRNGKey(0)
    k1, k2, k3, k4, k5 = jax.random.split(key, 5)

    # ---- small graph: exercises the resident-adjacency fast path -----------------
    N, F_IN, F_OUT = 8, 32, 16
    node_features = jax.random.normal(k1, (N, F_IN), dtype=jnp.float32)
    a = (jax.random.uniform(k2, (N, N)) > 0.5).astype(jnp.float32)
    adjacency = jnp.triu(a, 1) + jnp.triu(a, 1).T          # symmetric 0/1, no loops
    degree = jnp.concatenate(
        [jnp.zeros((1,), jnp.float32),                     # a zero exercises where()
         jax.random.randint(k3, (N - 1,), 1, 5).astype(jnp.float32)])
    weight = jax.random.normal(k4, (F_IN, F_OUT), dtype=jnp.float32) * 0.1
    bias = jax.random.normal(k5, (F_OUT,), dtype=jnp.float32) * 0.1

    out = interaction_graph_convolution(node_features, adjacency, degree, weight, bias)
    out = jax.block_until_ready(out)
    ref = _reference(node_features, adjacency, degree, weight, bias)
    # Tolerance covers the hi/lo bf16-split MXU path (~f32 accuracy) and f32
    # reassociation from folding the diagonal scalings into the matmul results.
    assert np.allclose(np.asarray(out), np.asarray(ref), rtol=1e-3, atol=1e-3)

    # ---- larger graph, forced streaming + multi-row-tile path --------------------
    k6, k7, k8, k9, k10 = jax.random.split(jax.random.PRNGKey(1), 5)
    N2, F_IN2, F_OUT2 = 40, 16, 8
    nf2 = jax.random.normal(k6, (N2, F_IN2), dtype=jnp.float32)
    a2 = (jax.random.uniform(k7, (N2, N2)) > 0.7).astype(jnp.float32)
    adj2 = jnp.triu(a2, 1) + jnp.triu(a2, 1).T
    deg2 = jnp.concatenate(
        [jnp.zeros((1,), jnp.float32),
         jax.random.randint(k8, (N2 - 1,), 1, 6).astype(jnp.float32)])
    w2 = jax.random.normal(k9, (F_IN2, F_OUT2), dtype=jnp.float32) * 0.1
    b2 = jax.random.normal(k10, (F_OUT2,), dtype=jnp.float32) * 0.1

    out2 = interaction_graph_convolution(nf2, adj2, deg2, w2, b2,
                                         tm=16, force_stream=True)
    out2 = jax.block_until_ready(out2)
    ref2 = _reference(nf2, adj2, deg2, w2, b2)
    assert np.allclose(np.asarray(out2), np.asarray(ref2), rtol=1e-3, atol=1e-3)

    print("KERNEL_OK")
</pallas_src>

<mosaic_0001>
module attributes {stable_mosaic.version = 11 : i64} {
  func.func @_igc_kernel(%arg0: i32, %arg1: i32, %arg2: memref<16x33xf32, #tpu.memory_space<vmem>>, %arg3: memref<16x16xbf16, #tpu.memory_space<vmem>>, %arg4: memref<16x1xf32, #tpu.memory_space<vmem>>, %arg5: memref<33x128xf32, #tpu.memory_space<vmem>>, %arg6: memref<1x128xf32, #tpu.memory_space<vmem>>, %arg7: memref<16x128xf32, #tpu.memory_space<vmem>>, %arg8: memref<16x128xbf16, #tpu.memory_space<vmem>>, %arg9: memref<16x128xbf16, #tpu.memory_space<vmem>>, %arg10: memref<16x128xbf16, #tpu.memory_space<vmem>>, %arg11: memref<16x128xbf16, #tpu.memory_space<vmem>>) attributes {dimension_semantics = [#tpu.dimension_semantics<arbitrary>, #tpu.dimension_semantics<arbitrary>], iteration_bounds = array<i64: 4, 1>, scalar_prefetch = 0 : i64, scratch_operands = 4 : i64, tpu.core_type = #tpu.core_type<tc>, window_params = [{transform_indices = @transform_0, window_bounds = array<i64: 16, 33>}, {pipeline_mode = #tpu.pipeline_mode<synchronous>, transform_indices = @transform_1, window_bounds = array<i64: 16, 16>}, {transform_indices = @transform_2, window_bounds = array<i64: 16, 1>}, {pipeline_mode = #tpu.pipeline_mode<synchronous>, transform_indices = @transform_3, window_bounds = array<i64: 33, 128>}, {pipeline_mode = #tpu.pipeline_mode<synchronous>, transform_indices = @transform_4, window_bounds = array<i64: 1, 128>}, {transform_indices = @transform_5, window_bounds = array<i64: 16, 128>}]} {
    %c16_i32 = arith.constant 16 : i32
    %0 = arith.muli %arg1, %c16_i32 : i32
    %1 = tpu.assume_multiple %0, 16 : i32
    %c0_i32 = arith.constant 0 : i32
    %2 = arith.cmpi eq, %arg0, %c0_i32 : i32
    %3 = arith.extui %2 : i1 to i32
    %c0_i32_0 = arith.constant 0 : i32
    %4 = arith.cmpi ne, %3, %c0_i32_0 : i32
    scf.if %4 {
      %c0 = arith.constant 0 : index
      %c0_4 = arith.constant 0 : index
      %14 = vector.load %arg2[%c0, %c0_4] : memref<16x33xf32, #tpu.memory_space<vmem>>, vector<16x33xf32>
      %c0_5 = arith.constant 0 : index
      %c0_6 = arith.constant 0 : index
      %15 = vector.load %arg5[%c0_5, %c0_6] : memref<33x128xf32, #tpu.memory_space<vmem>>, vector<33x128xf32>
      %cst = arith.constant dense<0.000000e+00> : vector<16x128xf32>
      %16 = tpu.matmul %14, %15, %cst {dimension_numbers = #tpu.dot_dimension_numbers<[1], [0], [0], [1], [0, 0, 1, 1], [], []>} : vector<16x33xf32>, vector<33x128xf32>, vector<16x128xf32> -> vector<16x128xf32>
      %c0_7 = arith.constant 0 : index
      %c0_8 = arith.constant 0 : index
      %17 = vector.load %arg6[%c0_7, %c0_8] : memref<1x128xf32, #tpu.memory_space<vmem>>, vector<1x128xf32>
      %18 = vector.broadcast %17 : vector<1x128xf32> to vector<16x128xf32>
      %19 = arith.addf %16, %18 : vector<16x128xf32>
      %20 = arith.truncf %19 : vector<16x128xf32> to vector<16x128xbf16>
      %21 = arith.extf %20 : vector<16x128xbf16> to vector<16x128xf32>
      %22 = arith.subf %19, %21 : vector<16x128xf32>
      %23 = arith.truncf %22 : vector<16x128xf32> to vector<16x128xbf16>
      %24 = arith.index_cast %1 : i32 to index
      %c0_9 = arith.constant 0 : index
      %25 = vector.load %arg8[%24, %c0_9] : memref<16x128xbf16, #tpu.memory_space<vmem>>, vector<16x128xbf16>
      tpu.vector_store %arg8[%24, %c0_9], %20 {strides = array<i32>} : memref<16x128xbf16, #tpu.memory_space<vmem>>, vector<16x128xbf16>,
      %26 = arith.index_cast %1 : i32 to index
      %c0_10 = arith.constant 0 : index
      %27 = vector.load %arg9[%26, %c0_10] : memref<16x128xbf16, #tpu.memory_space<vmem>>, vector<16x128xbf16>
      tpu.vector_store %arg9[%26, %c0_10], %23 {strides = array<i32>} : memref<16x128xbf16, #tpu.memory_space<vmem>>, vector<16x128xbf16>,
    } else {
    }
    %c1_i32 = arith.constant 1 : i32
    %5 = arith.cmpi eq, %arg0, %c1_i32 : i32
    %6 = arith.extui %5 : i1 to i32
    %c0_i32_1 = arith.constant 0 : i32
    %7 = arith.cmpi ne, %6, %c0_i32_1 : i32
    scf.if %7 {
      %c0 = arith.constant 0 : index
      %c0_4 = arith.constant 0 : index
      %14 = vector.load %arg4[%c0, %c0_4] : memref<16x1xf32, #tpu.memory_space<vmem>>, vector<16x1xf32>
      %15 = arith.index_cast %1 : i32 to index
      %c0_5 = arith.constant 0 : index
      %16 = vector.load %arg3[%15, %c0_5] : memref<16x16xbf16, #tpu.memory_space<vmem>>, vector<16x16xbf16>
      %c0_6 = arith.constant 0 : index
      %c0_7 = arith.constant 0 : index
      %17 = vector.load %arg8[%c0_6, %c0_7] : memref<16x128xbf16, #tpu.memory_space<vmem>>, vector<16x128xbf16>
      %cst = arith.constant dense<0.000000e+00> : vector<16x128xf32>
      %18 = tpu.matmul %16, %17, %cst {dimension_numbers = #tpu.dot_dimension_numbers<[1], [0], [0], [1], [0, 0, 1, 1], [], []>} : vector<16x16xbf16>, vector<16x128xbf16>, vector<16x128xf32> -> vector<16x128xf32>
      %c0_8 = arith.constant 0 : index
      %c0_9 = arith.constant 0 : index
      %19 = vector.load %arg9[%c0_8, %c0_9] : memref<16x128xbf16, #tpu.memory_space<vmem>>, vector<16x128xbf16>
      %cst_10 = arith.constant dense<0.000000e+00> : vector<16x128xf32>
      %20 = tpu.matmul %16, %19, %cst_10 {dimension_numbers = #tpu.dot_dimension_numbers<[1], [0], [0], [1], [0, 0, 1, 1], [], []>} : vector<16x16xbf16>, vector<16x128xbf16>, vector<16x128xf32> -> vector<16x128xf32>
      %21 = arith.addf %18, %20 : vector<16x128xf32>
      %22 = vector.broadcast %14 : vector<16x1xf32> to vector<16x128xf32>
      %23 = arith.mulf %22, %21 : vector<16x128xf32>
      %24 = arith.truncf %23 : vector<16x128xf32> to vector<16x128xbf16>
      %25 = arith.extf %24 : vector<16x128xbf16> to vector<16x128xf32>
      %26 = arith.subf %23, %25 : vector<16x128xf32>
      %27 = arith.truncf %26 : vector<16x128xf32> to vector<16x128xbf16>
      %28 = arith.index_cast %1 : i32 to index
      %c0_11 = arith.constant 0 : index
      %29 = vector.load %arg10[%28, %c0_11] : memref<16x128xbf16, #tpu.memory_space<vmem>>, vector<16x128xbf16>
      tpu.vector_store %arg10[%28, %c0_11], %24 {strides = array<i32>} : memref<16x128xbf16, #tpu.memory_space<vmem>>, vector<16x128xbf16>,
      %30 = arith.index_cast %1 : i32 to index
      %c0_12 = arith.constant 0 : index
      %31 = vector.load %arg11[%30, %c0_12] : memref<16x128xbf16, #tpu.memory_space<vmem>>, vector<16x128xbf16>
      tpu.vector_store %arg11[%30, %c0_12], %27 {strides = array<i32>} : memref<16x128xbf16, #tpu.memory_space<vmem>>, vector<16x128xbf16>,
    } else {
    }
    %c2_i32 = arith.constant 2 : i32
    %8 = arith.cmpi eq, %arg0, %c2_i32 : i32
    %9 = arith.extui %8 : i1 to i32
    %c0_i32_2 = arith.constant 0 : i32
    %10 = arith.cmpi ne, %9, %c0_i32_2 : i32
    scf.if %10 {
      %c0 = arith.constant 0 : index
      %c0_4 = arith.constant 0 : index
      %14 = vector.load %arg4[%c0, %c0_4] : memref<16x1xf32, #tpu.memory_space<vmem>>, vector<16x1xf32>
      %15 = arith.index_cast %1 : i32 to index
      %c0_5 = arith.constant 0 : index
      %16 = vector.load %arg3[%15, %c0_5] : memref<16x16xbf16, #tpu.memory_space<vmem>>, vector<16x16xbf16>
      %c0_6 = arith.constant 0 : index
      %c0_7 = arith.constant 0 : index
      %17 = vector.load %arg10[%c0_6, %c0_7] : memref<16x128xbf16, #tpu.memory_space<vmem>>, vector<16x128xbf16>
      %cst = arith.constant dense<0.000000e+00> : vector<16x128xf32>
      %18 = tpu.matmul %16, %17, %cst {dimension_numbers = #tpu.dot_dimension_numbers<[1], [0], [0], [1], [0, 0, 1, 1], [], []>} : vector<16x16xbf16>, vector<16x128xbf16>, vector<16x128xf32> -> vector<16x128xf32>
      %c0_8 = arith.constant 0 : index
      %c0_9 = arith.constant 0 : index
      %19 = vector.load %arg11[%c0_8, %c0_9] : memref<16x128xbf16, #tpu.memory_space<vmem>>, vector<16x128xbf16>
      %cst_10 = arith.constant dense<0.000000e+00> : vector<16x128xf32>
      %20 = tpu.matmul %16, %19, %cst_10 {dimension_numbers = #tpu.dot_dimension_numbers<[1], [0], [0], [1], [0, 0, 1, 1], [], []>} : vector<16x16xbf16>, vector<16x128xbf16>, vector<16x128xf32> -> vector<16x128xf32>
      %21 = arith.addf %18, %20 : vector<16x128xf32>
      %22 = arith.index_cast %1 : i32 to index
      %c0_11 = arith.constant 0 : index
      %23 = vector.load %arg10[%22, %c0_11] : memref<16x128xbf16, #tpu.memory_space<vmem>>, vector<16x128xbf16>
      %24 = arith.extf %23 : vector<16x128xbf16> to vector<16x128xf32>
      %25 = arith.index_cast %1 : i32 to index
      %c0_12 = arith.constant 0 : index
      %26 = vector.load %arg11[%25, %c0_12] : memref<16x128xbf16, #tpu.memory_space<vmem>>, vector<16x128xbf16>
      %27 = arith.extf %26 : vector<16x128xbf16> to vector<16x128xf32>
      %28 = arith.addf %24, %27 : vector<16x128xf32>
      %29 = vector.extract_strided_slice %28 {offsets = [0, 16], sizes = [16, 1], strides = [1, 1]} : vector<16x128xf32> to vector<16x1xf32>
      %30 = arith.subf %29, %14 : vector<16x1xf32>
      %cst_13 = arith.constant 0.000000e+00 : f32
      %31 = vector.broadcast %cst_13 : f32 to vector<16x1xf32>
      %32 = arith.cmpf oeq, %30, %31 : vector<16x1xf32>
      %cst_14 = arith.constant 1.000000e+00 : f32
      %33 = vector.broadcast %cst_14 : f32 to vector<16x1xf32>
      %34 = arith.select %32, %33, %30 : vector<16x1xi1>, vector<16x1xf32>
      %cst_15 = arith.constant 0.000000e+00 : f32
      %35 = vector.broadcast %cst_15 : f32 to vector<16x1xf32>
      %36 = arith.cmpf oeq, %14, %35 : vector<16x1xf32>
      %cst_16 = arith.constant 1.000000e+00 : f32
      %37 = vector.broadcast %cst_16 : f32 to vector<16x1xf32>
      %38 = arith.select %36, %37, %14 : vector<16x1xi1>, vector<16x1xf32>
      %39 = arith.mulf %34, %38 : vector<16x1xf32>
      %40 = tpu.reciprocal %39 : vector<16x1xf32> -> vector<16x1xf32>
      %41 = arith.mulf %14, %40 : vector<16x1xf32>
      %42 = vector.broadcast %41 : vector<16x1xf32> to vector<16x128xf32>
      %43 = arith.mulf %42, %21 : vector<16x128xf32>
      %44 = arith.index_cast %1 : i32 to index
      %c0_17 = arith.constant 0 : index
      %45 = vector.load %arg8[%44, %c0_17] : memref<16x128xbf16, #tpu.memory_space<vmem>>, vector<16x128xbf16>
      %46 = arith.extf %45 : vector<16x128xbf16> to vector<16x128xf32>
      %47 = arith.index_cast %1 : i32 to index
      %c0_18 = arith.constant 0 : index
      %48 = vector.load %arg9[%47, %c0_18] : memref<16x128xbf16, #tpu.memory_space<vmem>>, vector<16x128xbf16>
      %49 = arith.extf %48 : vector<16x128xbf16> to vector<16x128xf32>
      %50 = arith.addf %46, %49 : vector<16x128xf32>
      %51 = arith.subf %43, %50 : vector<16x128xf32>
      %52 = arith.mulf %50, %51 : vector<16x128xf32>
      %53 = arith.truncf %52 : vector<16x128xf32> to vector<16x128xbf16>
      %54 = arith.extf %53 : vector<16x128xbf16> to vector<16x128xf32>
      %55 = arith.subf %52, %54 : vector<16x128xf32>
      %56 = arith.truncf %55 : vector<16x128xf32> to vector<16x128xbf16>
      %57 = arith.index_cast %1 : i32 to index
      %c0_19 = arith.constant 0 : index
      %58 = vector.load %arg8[%57, %c0_19] : memref<16x128xbf16, #tpu.memory_space<vmem>>, vector<16x128xbf16>
      tpu.vector_store %arg8[%57, %c0_19], %53 {strides = array<i32>} : memref<16x128xbf16, #tpu.memory_space<vmem>>, vector<16x128xbf16>,
      %59 = arith.index_cast %1 : i32 to index
      %c0_20 = arith.constant 0 : index
      %60 = vector.load %arg9[%59, %c0_20] : memref<16x128xbf16, #tpu.memory_space<vmem>>, vector<16x128xbf16>
      tpu.vector_store %arg9[%59, %c0_20], %56 {strides = array<i32>} : memref<16x128xbf16, #tpu.memory_space<vmem>>, vector<16x128xbf16>,
    } else {
    }
    %c3_i32 = arith.constant 3 : i32
    %11 = arith.cmpi eq, %arg0, %c3_i32 : i32
    %12 = arith.extui %11 : i1 to i32
    %c0_i32_3 = arith.constant 0 : i32
    %13 = arith.cmpi ne, %12, %c0_i32_3 : i32
    scf.if %13 {
      %14 = arith.index_cast %1 : i32 to index
      %c0 = arith.constant 0 : index
      %15 = vector.load %arg3[%14, %c0] : memref<16x16xbf16, #tpu.memory_space<vmem>>, vector<16x16xbf16>
      %c0_4 = arith.constant 0 : index
      %c0_5 = arith.constant 0 : index
      %16 = vector.load %arg8[%c0_4, %c0_5] : memref<16x128xbf16, #tpu.memory_space<vmem>>, vector<16x128xbf16>
      %cst = arith.constant dense<0.000000e+00> : vector<16x128xf32>
      %17 = tpu.matmul %15, %16, %cst {dimension_numbers = #tpu.dot_dimension_numbers<[1], [0], [0], [1], [0, 0, 1, 1], [], []>} : vector<16x16xbf16>, vector<16x128xbf16>, vector<16x128xf32> -> vector<16x128xf32>
      %c0_6 = arith.constant 0 : index
      %c0_7 = arith.constant 0 : index
      %18 = vector.load %arg9[%c0_6, %c0_7] : memref<16x128xbf16, #tpu.memory_space<vmem>>, vector<16x128xbf16>
      %cst_8 = arith.constant dense<0.000000e+00> : vector<16x128xf32>
      %19 = tpu.matmul %15, %18, %cst_8 {dimension_numbers = #tpu.dot_dimension_numbers<[1], [0], [0], [1], [0, 0, 1, 1], [], []>} : vector<16x16xbf16>, vector<16x128xbf16>, vector<16x128xf32> -> vector<16x128xf32>
      %20 = arith.addf %17, %19 : vector<16x128xf32>
      %c0_9 = arith.constant 0 : index
      %c0_10 = arith.constant 0 : index
      %21 = vector.load %arg7[%c0_9, %c0_10] : memref<16x128xf32, #tpu.memory_space<vmem>>, vector<16x128xf32>
      tpu.vector_store %arg7[%c0_9, %c0_10], %20 {strides = array<i32>} : memref<16x128xf32, #tpu.memory_space<vmem>>, vector<16x128xf32>,
    } else {
    }
    return
  }
  func.func @transform_0(%arg0: i32, %arg1: i32) -> (i32, i32) {
    %c0_i32 = arith.constant 0 : i32
    %0 = arith.cmpi eq, %arg0, %c0_i32 : i32
    %c0_i32_0 = arith.constant 0 : i32
    %1 = arith.select %0, %arg1, %c0_i32_0 : i32
    %c0_i32_1 = arith.constant 0 : i32
    %c0_i32_2 = arith.constant 0 : i32
    return %1, %c0_i32_1 : i32, i32
  }
  func.func @transform_1(%arg0: i32, %arg1: i32) -> (i32, i32) {
    %c0_i32 = arith.constant 0 : i32
    %c0_i32_0 = arith.constant 0 : i32
    %c0_i32_1 = arith.constant 0 : i32
    return %c0_i32, %c0_i32_0 : i32, i32
  }
  func.func @transform_2(%arg0: i32, %arg1: i32) -> (i32, i32) {
    %c1_i32 = arith.constant 1 : i32
    %0 = arith.cmpi eq, %arg0, %c1_i32 : i32
    %c2_i32 = arith.constant 2 : i32
    %1 = arith.cmpi eq, %arg0, %c2_i32 : i32
    %2 = arith.ori %0, %1 : i1
    %c0_i32 = arith.constant 0 : i32
    %3 = arith.select %2, %arg1, %c0_i32 : i32
    %c0_i32_0 = arith.constant 0 : i32
    %c0_i32_1 = arith.constant 0 : i32
    return %3, %c0_i32_0 : i32, i32
  }
  func.func @transform_3(%arg0: i32, %arg1: i32) -> (i32, i32) {
    %c0_i32 = arith.constant 0 : i32
    %c0_i32_0 = arith.constant 0 : i32
    %c0_i32_1 = arith.constant 0 : i32
    return %c0_i32, %c0_i32_0 : i32, i32
  }
  func.func @transform_4(%arg0: i32, %arg1: i32) -> (i32, i32) {
    %c0_i32 = arith.constant 0 : i32
    %c0_i32_0 = arith.constant 0 : i32
    %c0_i32_1 = arith.constant 0 : i32
    return %c0_i32, %c0_i32_0 : i32, i32
  }
  func.func @transform_5(%arg0: i32, %arg1: i32) -> (i32, i32) {
    %c3_i32 = arith.constant 3 : i32
    %0 = arith.cmpi eq, %arg0, %c3_i32 : i32
    %c0_i32 = arith.constant 0 : i32
    %1 = arith.select %0, %arg1, %c0_i32 : i32
    %c0_i32_0 = arith.constant 0 : i32
    %c0_i32_1 = arith.constant 0 : i32
    return %1, %c0_i32_0 : i32, i32
  }
}

</mosaic_0001>

<bundles_post_ra>
// kernel: tpu_custom_call.1
= control target key start
LH: loop header
LB: loop body
LE: loop exit
PB: predicated region body
PF: predicated region fallthrough
CT: control target
= control target key end

     0   :  { %10 = vsyncpa [#allocation7], 0  ;;  %s1372_s0 = inlined_call_operand.vmem [shape: f32[16,33], index: 0, kind: input, shape index: {}]   ;;  %s1373_s1 = inlined_call_operand.hbm [shape: bf16[16,16], index: 1, kind: input, shape index: {}]   ;;  %s1374_s2 = inlined_call_operand.vmem [shape: f32[16,1], index: 2, kind: input, shape index: {}]   ;;  %s1375_s3 = inlined_call_operand.hbm [shape: f32[33,128], index: 3, kind: input, shape index: {}]   ;;  %s1376_s4 = inlined_call_operand.vmem [shape: f32[1,128], index: 4, kind: input, shape index: {}]   ;;  %s1377_s5 = inlined_call_operand.hbm [shape: f32[16,128], index: 5, kind: output, shape index: {}]  }
   0x1   :  { %11 = vsyncpa [#allocation10], 0 }
   0x2   :  { %12 = vsyncpa [#allocation8], 0 }
   0x3   :  { %14 = vsyncpa [#allocation8 + $0x1], 0  ;;  %s1266_s18 = smov 0   ;;  %s1268_s19 = smov 0  }
   0x4   :  { %s1270_s20 = smov 0  }
   0x5 LB: > { %s900_s21 = sadd.s32 4294967295, %s1221_s20   ;;  %s901_s22 = sadd.s32 4294967294, %s1221_s20   ;;  %s1221_s20 = sphi %s1270_s20, %s20_s20   ;;  %s1217_s19 = sphi %s1268_s19, %s1381_s19   ;;  %s1213_s18 = sphi %s1266_s18, %s1380_s18  }
   0x6   : > { %s32_s23 = sadd.s32 1, %s1217_s19  ;;  %p902_p0 = scmp.ge.s32.totalorder %s1221_s20, 1 }
   0x7   : > { %p34_p1 = scmp.ge.s32.totalorder %s32_s23, 4  ;;  %p194_p2 = scmp.lt.s32.totalorder %s1221_s20, 5 }
   0x8   : > { %p1288_p3 = scmp.eq.s32.totalorder %s900_s21, 0  ;;  %s205_s28 = sshll.u32 %s1373_s1, 4  ;;  %s206_s28 = int_to_ptr.hbm [resolvable:$true] %s205_s28 }
   0x9   : > { %s1383_s23 = smov (%p34_p1, %s32_s23), 0  ;;  %p1294_p4 = pnand %p902_p0, %p194_p2 }
   0xa   : > { %s1223_s29 = smov [#allocation6]   ;;  %s219_s8 = sshll.u32 %s1375_s3, 4  ;;  %s220_s8 = int_to_ptr.hbm [resolvable:$true] %s219_s8 }
   0xb   : > { %p1036_p5 = pneg %p1294_p4  ;;  %s207_s30 = sshll.u32 %s1223_s29, 4  ;;  %s208_s30 = int_to_ptr.vmem [resolvable:$true] %s207_s30 }
   0xc   : > { %s1224_s9 = smov 64   ;;  %s1225_s10 = smov 4  }
   0xd   : > { %p1037_p6 = pnand %p1288_p3, %p1036_p5  ;;  %s1226_s11 = smov [#allocation9]  }
   0xe   : > { %s221_s12 = sshll.u32 %s1226_s11, 4  ;;  %s1227_s13 = smov 128   ;;  %s222_s12 = int_to_ptr.vmem [resolvable:$true] %s221_s12 }
   0xf   : > { %1039 = dma.hbm_to_vmem [thread:$0]  (!%p1037_p6), %s206_s28, 128, %s208_s30, [#allocation7], %s1224_s9, %s1224_s9, %s1225_s10  }
  0x10   : > { %s1228_s14 = smov 8   ;;  %270 = sbr.rel (%p1294_p4) target bundleno = 866 (0x362), region = 40 }
  0x11   : > { %1042 = dma.hbm_to_vmem [thread:$0]  (!%p1037_p6), %s220_s8, 640, %s222_s12, [#allocation10], %s1227_s13, %s1227_s13, %s1228_s14  }
  0x15   : > { %1200 = dma.done.wait (%p1288_p3), [#allocation7], 128  }
  0x16   : > { %1202 = vsyncadd (%p1288_p3), [#allocation7], 4294967168 }
  0x17   : > { %1204 = dma.done.wait (%p1288_p3), [#allocation10], 640  }
  0x18   : > { %1206 = vsyncadd (%p1288_p3), [#allocation10], 4294966656  ;;  %p911_p7 = scmp.ne.s32.totalorder %s1213_s18, 0 }
  0x1a   : > { %347 = sbr.rel (%p911_p7) target bundleno = 178 (0xb2), region = 52 }
  0x1f   : > { %v354_v0 = vld [vmem:[#allocation9 + $0x20] sm:$0x1]  ;;  %vm366_vm0 = vcmask 1040384   ;;  %v353_v1 = vld [vmem:[#allocation9 + $0x18] sm:$0xff]  ;;  %v352_v2 = vld [vmem:[#allocation9 + $0x10] sm:$0xff]  ;;  %vm359_vm1 = vcmask 269312  }
  0x20   : > { %912 = vmatpush.msk.msra.mxu0 %vm366_vm0, %v354_v0  ;;  %1019 = vmatpush.msk.msra.mxu1 %vm366_vm0, %v354_v0  ;;  %v351_v3 = vld [vmem:[#allocation9 + $0x8] sm:$0xff]  ;;  %v350_v4 = vld [vmem:[#allocation9] sm:$0xff]  ;;  %v348_v5 = vld [vmem:[%s1372_s0] sm:$0xff] }
  0x21   : > { %v349_v6 = vld [vmem:[%s1372_s0 + $0x8] sm:$0xff]  ;;  %v1091_v7 = vld [vmem:[%s1376_s4] ss:$0 sm:$0xff] }
  0x22   : > { %382 = vmatpush.msra.mxu0 %v353_v1  ;;  %1020 = vmatpush.msra.mxu1 %v353_v1 }
  0x24   : > { %383 = vmatpush.msra.mxu0 %v352_v2  ;;  %1021 = vmatpush.msra.mxu1 %v352_v2 }
  0x26   : > { %384 = vmatpush.msra.mxu0 %v351_v3  ;;  %1022 = vmatpush.msra.mxu1 %v351_v3 }
  0x28   : > { %385 = vmatpush.msra.mxu0 %v350_v4  ;;  %1023 = vmatpush.msra.mxu1 %v350_v4 }
  0x29   : > { %913 = vmatmul.msk.f32.vlgmr.msra.gmra.mxu0 %vm359_vm1, %v348_v5  ;;  %914 = vmatmul.msk.f32.vlgmr.msra.gmra.mxu1 %vm359_vm1, %v349_v6 }
  0xa6   : > { %v387_v8 = vpop.f32.mrf.mxu0  ;;  %v390_v9 = vpop.f32.mrf.mxu1 }
  0xa7   : > { %v388_v10 = vadd.f32 %v1091_v7, %v387_v8  ;;  %v391_v11 = vadd.f32 %v1091_v7, %v390_v9 }
  0xa9   : > { %v393_v12 = vpack.c.bf16 %v388_v10, %v388_v10  ;;  %v394_v13 = vpack.c.bf16 %v391_v11, %v391_v11  ;;  %v976_v14 = vpack.c.bf16 %v391_v11, %v388_v10 }
  0xab   : > { %v395_v15 = vunpack.c.l.bf16 %v393_v12  ;;  %v396_v16 = vunpack.c.l.bf16 %v394_v13  ;;  %977 = vst [vmem:[#allocation2] sm:$0xff] %v976_v14  }
  0xad   : > { %v397_v17 = vsub.f32 %v388_v10, %v395_v15  ;;  %v398_v18 = vsub.f32 %v391_v11, %v396_v16 }
  0xaf   : > { %v981_v19 = vpack.c.bf16 %v398_v18, %v397_v17 }
  0xb1   : > { %982 = vst [vmem:[#allocation3] sm:$0xff] %v981_v19  }
  0xb2 PF: > { %p915_p8 = scmp.ne.s32.totalorder %s1213_s18, 1 }
  0xb4   : > { %414 = sbr.rel (%p915_p8) target bundleno = 337 (0x151), region = 56 }
  0xb9   : > { %v966_v20 = vld [vmem:[#allocation3] sm:$0xff]  ;;  %v965_v21 = vld [vmem:[#allocation2] sm:$0xff]  ;;  %v1229_v23 = vmov 0   ;;  %vm438_vm2 = vcmask 130048  }
  0xba   : > { %v964_v22 = vld [vmem:[#allocation6] sm:$0xff]  ;;  %1092 = vset.pattern.permute.xlu0 %v1229_v23  ;;  %449 = vmatpush.bf16.msra.mxu0 %v966_v20  ;;  %v416_v25 = vld [vmem:[%s1374_s2 + $0x8] sm:$0xff] }
  0xbb   : > { %v415_v24 = vld [vmem:[%s1374_s2] sm:$0xff]  ;;  %469 = vmatpush.bf16.msra.mxu1 %v965_v21 }
  0xbc   : > { %478 = vperm.xlu0 %1092, %v415_v24  }
  0xbd   : > { %924 = vmatmul.msk.bf16.vlgmr.msra.gmra.mxu0 %vm438_vm2, %v964_v22 }
  0xbe   : > { %929 = vmatmul.msk.bf16.vlgmr.msra.gmra.mxu1 %vm438_vm2, %v964_v22 }
  0xc4   : > { %483 = vperm.xlu0 %1092, %v416_v25  }
 0x12e   : > { %v479_v26 = vpop.permute.xlu0 %478 }
 0x136   : > { %v484_v35 = vpop.permute.xlu0 %483 }
 0x13a   : > { %v451_v27 = vpop.f32.mrf.mxu0 }
 0x13b   : > { %v471_v28 = vpop.f32.mrf.mxu1 }
 0x13c   : > { %v472_v29 = vadd.f32 %v471_v28, %v451_v27 }
 0x13e   : > { %v486_v30 = vmul.f32 %v479_v26, %v472_v29 }
 0x140   : > { %v488_v33 = vpack.c.bf16 %v486_v30, %v486_v30 }
 0x142   : > { %v453_v31 = vpop.f32.mrf.mxu0  ;;  %v490_v37 = vunpack.c.l.bf16 %v488_v33 }
 0x143   : > { %v473_v32 = vpop.f32.mrf.mxu1 }
 0x144   : > { %v474_v34 = vadd.f32 %v473_v32, %v453_v31  ;;  %v492_v41 = vsub.f32 %v486_v30, %v490_v37 }
 0x146   : > { %v487_v36 = vmul.f32 %v484_v35, %v474_v34 }
 0x148   : > { %v489_v38 = vpack.c.bf16 %v487_v36, %v487_v36  ;;  %v986_v39 = vpack.c.bf16 %v487_v36, %v486_v30 }
 0x14a   : > { %v491_v40 = vunpack.c.l.bf16 %v489_v38  ;;  %987 = vst [vmem:[#allocation4] sm:$0xff] %v986_v39  }
 0x14c   : > { %v493_v42 = vsub.f32 %v487_v36, %v491_v40 }
 0x14e   : > { %v991_v43 = vpack.c.bf16 %v493_v42, %v492_v41 }
 0x150   : > { %992 = vst [vmem:[#allocation5] sm:$0xff] %v991_v43  }
 0x151 PF: > { %p930_p9 = scmp.ne.s32.totalorder %s1213_s18, 2 }
 0x152   : > { %s1230_s8 = smov (!%p930_p9), 16   ;;  %s1231_s11 = smov (!%p930_p9), 112  }
 0x153   : > { %507 = sbr.rel (%p930_p9) target bundleno = 714 (0x2ca), region = 60 }
 0x158   : > { %v1339_v44 = vld [vmem:[%s1374_s2] sm:$0xff]  ;;  %v1347_v46 = vld [vmem:[%s1374_s2 + $0x8] sm:$0xff]  ;;  %v994_v48 = vld [vmem:[#allocation4] sm:$0xff]   ;;  %vm531_vm5 = vcmask 130048   ;;  %v1232_v25 = vmov 0  }
 0x159   : > { %585 = vrot.lane.b32.xlu0 %v1339_v44, %s1230_s8  ;;  %vm597_vm3 = vcmp.eq.f32.partialorder %v1339_v44, 0.0  ;;  %vm598_vm4 = vcmp.eq.f32.partialorder %v1347_v46, 0.0  ;;  %v998_v49 = vld [vmem:[#allocation5] sm:$0xff]   ;;  %v995_v50 = vunpack.c.l.bf16 %v994_v48  ;;  %v968_v55 = vld [vmem:[#allocation4] sm:$0xff]  ;;  %v996_v57 = vunpack.c.h.bf16 %v994_v48  ;;  %v967_v59 = vld [vmem:[#allocation6] sm:$0xff]  ;;  %1094 = vset.pattern.permute.xlu1 %v1232_v25 }
 0x15a   : > { %v599_v45 = vsel %vm597_vm3, 1.0, %v1339_v44  ;;  %v600_v47 = vsel %vm598_vm4, 1.0, %v1347_v46  ;;  %v999_v51 = vunpack.c.l.bf16 %v998_v49  ;;  %v969_v54 = vld [vmem:[#allocation5] sm:$0xff]  ;;  %v1000_v58 = vunpack.c.h.bf16 %v998_v49  ;;  %562 = vmatpush.bf16.msra.mxu1 %v968_v55  ;;  %1093 = vset.pattern.permute.xlu0 %v1232_v25  ;;  %v1002_v30 = vld [vmem:[#allocation2] sm:$0xff]   ;;  %v1006_v31 = vld [vmem:[#allocation3] sm:$0xff]  }
 0x15b   : > { %603 = vrot.lane.b32.xlu1 %v599_v45, %s1230_s8  ;;  %542 = vmatpush.bf16.msra.mxu0 %v969_v54  ;;  %v1003_v34 = vunpack.c.l.bf16 %v1002_v30  ;;  %v1007_v35 = vunpack.c.l.bf16 %v1006_v31  ;;  %v1004_v41 = vunpack.c.h.bf16 %v1002_v30  ;;  %v1008_v42 = vunpack.c.h.bf16 %v1006_v31 }
 0x15c   : > { %v581_v52 = vadd.f32 %v999_v51, %v995_v50  ;;  %v582_v63 = vadd.f32 %v1000_v58, %v996_v57 }
 0x15d   : > { %944 = vmatmul.msk.bf16.vlgmr.msra.gmra.mxu1 %vm531_vm5, %v967_v59  ;;  %v673_v37 = vadd.f32 %v1007_v35, %v1003_v34  ;;  %v674_v48 = vadd.f32 %v1008_v42, %v1004_v41 }
 0x15e   : > { %939 = vmatmul.msk.bf16.vlgmr.msra.gmra.mxu0 %vm531_vm5, %v967_v59 }
 0x161   : > { %587 = vrot.lane.b32.xlu0 %v1347_v46, %s1230_s8 }
 0x163   : > { %605 = vrot.lane.b32.xlu1 %v600_v47, %s1230_s8 }
 0x1cb   : > { %v586_v53 = vpop.permute.xlu0 %585 }
 0x1cc   : > { %v591_v56 = vsub.f32 %v581_v52, %v586_v53 }
 0x1cd   : > { %v604_v60 = vpop.permute.xlu1 %603 }
 0x1ce   : > { %vm593_vm6 = vcmp.eq.f32.partialorder %v591_v56, 0.0 }
 0x1cf   : > { %v595_v61 = vsel %vm593_vm6, 1.0, %v591_v56 }
 0x1d0   : > { %v609_v62 = vmul.f32 %v604_v60, %v595_v61 }
 0x1d2   : > { %1095 = vrcp.f32 %v609_v62  ;;  %v622_v8 = vand.u32 2147483648, %v609_v62  ;;  %v620_v10 = vand.u32 2147483647, %v609_v62  ;;  %vm616_vm9 = vweird.f32 %v609_v62 }
 0x1d3   : > { %v588_v0 = vpop.permute.xlu0 %587 }
 0x1d4   : > { %v592_v1 = vsub.f32 %v582_v63, %v588_v0  ;;  %v623_v13 = vor.u32 1.1754944e-38, %v622_v8  ;;  %vm621_vm11 = vcmp.eq.f32.partialorder %v620_v10, 8.507059e+37 }
 0x1d5   : > { %v606_v2 = vpop.permute.xlu1 %605 }
 0x1d6   : > { %vm594_vm7 = vcmp.eq.f32.partialorder %v592_v1, 0.0 }
 0x1d7   : > { %v596_v3 = vsel %vm594_vm7, 1.0, %v592_v1 }
 0x1d8   : > { %v1096_v4 = vpop.eup %1095  ;;  %v610_v5 = vmul.f32 %v606_v2, %v596_v3 }
 0x1d9   : > { %v612_v6 = vmul.f32 %v1096_v4, %v609_v62  ;;  %vm617_vm8 = vweird.f32 %v1096_v4 }
 0x1da   : > { %1097 = vrcp.f32 %v610_v5  ;;  %vm618_vm10 = vmor %vm616_vm9, %vm617_vm8  ;;  %v636_v18 = vand.u32 2147483648, %v610_v5  ;;  %v634_v20 = vand.u32 2147483647, %v610_v5  ;;  %vm630_vm13 = vweird.f32 %v610_v5  ;;  %v564_v33 = vpop.f32.mrf.mxu1 }
 0x1db   : > { %v613_v7 = vsub.f32 1.0, %v612_v6  ;;  %v544_v32 = vpop.f32.mrf.mxu0 }
 0x1dc   : > { %v637_v22 = vor.u32 1.1754944e-38, %v636_v18  ;;  %vm635_vm15 = vcmp.eq.f32.partialorder %v634_v20, 8.507059e+37  ;;  %v565_v36 = vadd.f32 %v564_v33, %v544_v32 }
 0x1dd   : > { %v614_v9 = vmul.f32 %v1096_v4, %v613_v7 }
 0x1df   : > { %v615_v11 = vadd.f32 %v1096_v4, %v614_v9 }
 0x1e0   : > { %v1098_v12 = vpop.eup %1097 }
 0x1e1   : > { %v619_v14 = vsel %vm618_vm10, %v1096_v4, %v615_v11  ;;  %v626_v15 = vmul.f32 %v1098_v12, %v610_v5  ;;  %vm631_vm12 = vweird.f32 %v1098_v12 }
 0x1e2   : > { %v624_v16 = vsel %vm621_vm11, %v623_v13, %v619_v14  ;;  %vm632_vm14 = vmor %vm630_vm13, %vm631_vm12 }
 0x1e3   : > { %641 = vrot.lane.b32.xlu2 %v624_v16, %s1231_s11  ;;  %v627_v17 = vsub.f32 1.0, %v626_v15  ;;  %v546_v43 = vpop.f32.mrf.mxu0 }
 0x1e5   : > { %v628_v19 = vmul.f32 %v1098_v12, %v627_v17 }
 0x1e7   : > { %v629_v21 = vadd.f32 %v1098_v12, %v628_v19 }
 0x1e9   : > { %v633_v23 = vsel %vm632_vm14, %v1098_v12, %v629_v21 }
 0x1ea   : > { %v638_v24 = vsel %vm635_vm15, %v637_v22, %v633_v23 }
 0x1eb   : > { %643 = vrot.lane.b32.xlu2 %v638_v24, %s1231_s11 }
 0x23d   : > { %v642_v26 = vpop.permute.xlu2 %641 }
 0x23e   : > { %v647_v27 = vmul.f32 %v642_v26, %v1339_v44  ;;  %v566_v44 = vpop.f32.mrf.mxu1 }
 0x23f   : > { %v567_v45 = vadd.f32 %v566_v44, %v546_v43 }
 0x240   : > { %651 = vperm.xlu0 %1093, %v647_v27  }
 0x245   : > { %v644_v28 = vpop.permute.xlu2 %643 }
 0x246   : > { %v648_v29 = vmul.f32 %v644_v28, %v1347_v46 }
 0x248   : > { %656 = vperm.xlu1 %1094, %v648_v29  }
 0x2b2   : > { %v652_v38 = vpop.permute.xlu0 %651 }
 0x2b3   : > { %v659_v39 = vmul.f32 %v652_v38, %v565_v36 }
 0x2b5   : > { %v675_v40 = vsub.f32 %v659_v39, %v673_v37 }
 0x2b7   : > { %v677_v47 = vmul.f32 %v675_v40, %v673_v37 }
 0x2b9   : > { %v679_v50 = vpack.c.bf16 %v677_v47, %v677_v47 }
 0x2ba   : > { %v657_v46 = vpop.permute.xlu1 %656 }
 0x2bb   : > { %v660_v49 = vmul.f32 %v657_v46, %v567_v45  ;;  %v681_v53 = vunpack.c.l.bf16 %v679_v50 }
 0x2bd   : > { %v676_v51 = vsub.f32 %v660_v49, %v674_v48  ;;  %v683_v57 = vsub.f32 %v677_v47, %v681_v53 }
 0x2bf   : > { %v678_v52 = vmul.f32 %v676_v51, %v674_v48 }
 0x2c1   : > { %v680_v54 = vpack.c.bf16 %v678_v52, %v678_v52  ;;  %v1012_v55 = vpack.c.bf16 %v678_v52, %v677_v47 }
 0x2c3   : > { %v682_v56 = vunpack.c.l.bf16 %v680_v54  ;;  %1013 = vst [vmem:[#allocation2] sm:$0xff] %v1012_v55  }
 0x2c5   : > { %v684_v58 = vsub.f32 %v678_v52, %v682_v56 }
 0x2c7   : > { %v1017_v59 = vpack.c.bf16 %v684_v58, %v683_v57 }
 0x2c9   : > { %1018 = vst [vmem:[#allocation3] sm:$0xff] %v1017_v59  }
 0x2ca PF: > { %p945_p10 = scmp.ne.s32.totalorder %s1213_s18, 3 }
 0x2cc   : > { %694 = sbr.rel (%p945_p10) target bundleno = 862 (0x35e), region = 64 }
 0x2d1   : > { %v972_v60 = vld [vmem:[#allocation3] sm:$0xff]  ;;  %v971_v61 = vld [vmem:[#allocation2] sm:$0xff]  ;;  %vm716_vm0 = vcmask 130048  }
 0x2d2   : > { %v970_v62 = vld [vmem:[#allocation6] sm:$0xff]  ;;  %727 = vmatpush.bf16.msra.mxu0 %v972_v60  ;;  %747 = vmatpush.bf16.msra.mxu1 %v971_v61 }
 0x2d5   : > { %954 = vmatmul.msk.bf16.vlgmr.msra.gmra.mxu0 %vm716_vm0, %v970_v62  ;;  %959 = vmatmul.msk.bf16.vlgmr.msra.gmra.mxu1 %vm716_vm0, %v970_v62 }
 0x352   : > { %v729_v63 = vpop.f32.mrf.mxu0  ;;  %v749_v0 = vpop.f32.mrf.mxu1 }
 0x353   : > { %v750_v1 = vadd.f32 %v749_v0, %v729_v63 }
 0x355   : > { %754 = vst [vmem:[#allocation11] sm:$0xff] %v750_v1 }
 0x35a   : > { %v731_v2 = vpop.f32.mrf.mxu0  ;;  %v751_v3 = vpop.f32.mrf.mxu1 }
 0x35b   : > { %v752_v4 = vadd.f32 %v751_v3, %v731_v2 }
 0x35d   : > { %755 = vst [vmem:[#allocation11 + $0x8] sm:$0xff] %v752_v4 }
 0x35e PF: > { %p1051_p11 = scmp.eq.s32.totalorder %s900_s21, 3  ;;  %s773_s13 = sshll.u32 %s1377_s5, 4  ;;  %s774_s13 = int_to_ptr.hbm [resolvable:$true] %s773_s13 }
 0x35f   : > { %s1233_s14 = smov [#allocation11]   ;;  %s1234_s16 = smov 128  }
 0x360   : > { %s771_s15 = sshll.u32 %s1233_s14, 4  ;;  %s1235_s17 = smov 8   ;;  %s772_s15 = int_to_ptr.vmem [resolvable:$true] %s771_s15 }
 0x361   : > { %1033 = dma.vmem_to_hbm [thread:$0]  (%p1051_p11), %s772_s15, 256, %s774_s13, [#allocation8], %s1234_s16, %s1234_s16, %s1235_s17  }
 0x362 PF: > { %p1052_p12 = scmp.ge.s32.totalorder %s1221_s20, 2  ;;  %p1053_p13 = scmp.eq.s32.totalorder %s901_s22, 3 }
 0x364   : > { %p1044_p0 = pnand %p1053_p13, %p1052_p12 }
 0x366   : > { %p1045_p1 = pneg %p1044_p0 }
 0x368   : > { %1208 = dma.done.wait (%p1045_p1), [#allocation8], 256  }
 0x369   : > { %1210 = vsyncadd (%p1045_p1), [#allocation8], 4294967040  ;;  %s20_s20 = sadd.s32 1, %s1221_s20   ;;  %s1380_s18 = smov %s1217_s19 }
 0x36a   : > { %p17_p2 = scmp.ge.s32.totalorder %s20_s20, 6   ;;  %s1381_s19 = smov %s1383_s23 }
 0x36c   :  { %19 = sbr.rel (!%p17_p2) target bundleno = 5 (0x5), region = 114 }
 0x371   :  { %795 = vsyncpa [#allocation7], 1 }
 0x372   :  { %797 = vsyncpa [#allocation7 + $0x1], 1 }
 0x373   :  { %798 = vsyncpa [#allocation10], 1 }
 0x374   :  { %799 = vsyncpa [#allocation8], 1 }
 0x375   :  { %801 = vsyncpa [#allocation8 + $0x1], 1 }

</bundles_post_ra>
